<compile_context>
chip_gen: v5e
topology: v5e:2x2
jax: 0.10.0
libtpu: 0.0.40
codegen_flags: <defaults>
</compile_context>

<pallas_src>
import functools

import jax
import jax.numpy as jnp
import numpy as np
from jax.experimental import pallas as pl
from jax.experimental.pallas import tpu as pltpu

HIDDEN = 80  # fixed by the module definition


def _round_up(v, m):
    return ((v + m - 1) // m) * m


def _device_kind():
    try:
        return jax.devices()[0].device_kind.lower()
    except Exception:
        return ""


def _default_num_shards():
    # 2 TensorCores per chip only on v7x-class parts; v5e/v6e are single-TC.
    return 2 if "7" in _device_kind() else 1


def _vmem_limit_bytes():
    # v7x: 64 MiB physical VMEM -> keep 32 MiB scoped; v5e/v6e: 128 MiB -> allow 64 MiB.
    return (32 << 20) if "7" in _device_kind() else (64 << 20)


def _discriminator_kernel(x_ref, w1_ref, b1_ref, w2_ref, b2_ref, o_ref, acc_ref,
                          *, valid_rows):
    c = pl.program_id(0)             # shard axis ("parallel"; >1 only on 2-TC chips)
    j = pl.program_id(1)             # batch-tile axis ("arbitrary", reduction)
    nb = pl.num_programs(1)

    @pl.when(j == 0)
    def _init():
        acc_ref[...] = jnp.zeros_like(acc_ref)

    # ---- layer 1 on this batch tile (MXU, f32 accumulation) ----
    h = jnp.dot(x_ref[...], w1_ref[...], preferred_element_type=jnp.float32)
    h = jnp.maximum(h + b1_ref[...], 0.0)                 # (tb, hidden_pad) f32
    tb, hp = h.shape
    row0 = (c * nb + j) * tb

    def _accumulate(hv):
        # Per-sublane partial sums: vreg-wise adds only; 8->1 collapse at finalize.
        if tb % 8 == 0:
            acc_ref[...] += jnp.sum(hv.reshape(tb // 8, 8, hp), axis=0)
        else:  # only reachable for a single whole-batch tile (tb == B, B % 8 != 0)
            acc_ref[0:1, :] += jnp.sum(hv, axis=0, keepdims=True)

    # Full interior tiles skip all masking work; only the ragged boundary tile
    # (and fully out-of-range shard-padding tiles) pay for iota/compare/select.
    @pl.when(row0 + tb <= valid_rows)
    def _full_tile():
        _accumulate(h)

    @pl.when(row0 + tb > valid_rows)
    def _boundary_tile():
        rows = row0 + jax.lax.broadcasted_iota(jnp.int32, (tb, 1), 0)
        _accumulate(jnp.where(rows < valid_rows, h, 0.0))

    # ---- finalize: batch mean folded before layer 2 ----
    @pl.when(j == nb - 1)
    def _finalize():
        col_sum = jnp.sum(acc_ref[...], axis=0, keepdims=True)        # (1, hidden_pad)
        mean_h = col_sum * (1.0 / valid_rows)
        mean_h = jnp.broadcast_to(mean_h, (o_ref.shape[0], hp))       # (8, hidden_pad)
        y = jnp.dot(mean_h, w2_ref[...], preferred_element_type=jnp.float32)
        y = y + (c == 0).astype(jnp.float32) * b2_ref[...]            # add b2 exactly once
        o_ref[...] = y.astype(o_ref.dtype)


def discriminator_forward(x, w1, b1, w2, b2, *, block_rows=None, num_shards=None):
    """x: (B, num_inputs) in f32 or bf16 (streamed as-is, no copy);
    w1: (num_inputs, 80); b1: (80,); w2: (80, num_outputs); b2: (num_outputs,).
    Returns (num_outputs,) f32 = mean_over_batch(relu(x @ w1 + b1) @ w2 + b2)."""
    B, num_inputs = x.shape
    hidden, num_outputs = w2.shape
    assert w1.shape == (num_inputs, hidden)

    hidden_pad = _round_up(hidden, 128)        # 80 -> 128 (lane-dense h / acc)
    out_pad = _round_up(num_outputs, 128)      # lane-dense final store
    itemsize = jnp.dtype(x.dtype).itemsize

    # ---- batch tile: VMEM-budgeted (x tile <= ~4 MiB, h intermediate <= ~4 MiB) ----
    if block_rows is None:
        tb = (4 * 1024 * 1024) // max(1, num_inputs * itemsize)
        tb = min(tb, (4 * 1024 * 1024) // (hidden_pad * 4))
        tb = max(tb, 8)
    else:
        tb = max(8, block_rows)
    if tb >= B:
        tb = B                       # single tile covering the whole batch
    else:
        tb = (tb // 8) * 8           # keep the (8, 128) sublane constraint

    n_tiles = pl.cdiv(B, tb)

    # ---- shard axis: only >1 on 2-TensorCore chips (v7x) ----
    if num_shards is None:
        num_shards = _default_num_shards()
    nc = num_shards if (num_shards > 1 and n_tiles >= num_shards) else 1
    nb = pl.cdiv(n_tiles, nc)
    clamp_idx = (nc * nb) != n_tiles   # keep every block index in-bounds

    # Tiny weight operands, padded lane-dense (x itself is NOT copied or padded).
    wdt = x.dtype
    w1_p = jnp.zeros((num_inputs, hidden_pad), wdt).at[:, :hidden].set(w1.astype(wdt))
    b1_p = jnp.zeros((1, hidden_pad), jnp.float32).at[0, :hidden].set(
        b1.astype(jnp.float32))
    w2_p = jnp.zeros((hidden_pad, out_pad), jnp.float32).at[:hidden, :num_outputs].set(
        w2.astype(jnp.float32))
    b2_p = jnp.zeros((1, out_pad), jnp.float32).at[0, :num_outputs].set(
        b2.astype(jnp.float32))

    def x_index_map(c, j):
        idx = c * nb + j
        if clamp_idx:
            idx = jnp.minimum(idx, n_tiles - 1)   # shard-padding tiles re-read last tile
        return (idx, 0)

    out = pl.pallas_call(
        functools.partial(_discriminator_kernel, valid_rows=B),
        out_shape=jax.ShapeDtypeStruct((nc * 8, out_pad), jnp.float32),
        grid_spec=pltpu.PrefetchScalarGridSpec(
            num_scalar_prefetch=0,
            grid=(nc, nb),
            in_specs=[
                pl.BlockSpec((tb, num_inputs), x_index_map),
                pl.BlockSpec((num_inputs, hidden_pad), lambda c, j: (0, 0)),
                pl.BlockSpec((1, hidden_pad), lambda c, j: (0, 0)),
                pl.BlockSpec((hidden_pad, out_pad), lambda c, j: (0, 0)),
                pl.BlockSpec((1, out_pad), lambda c, j: (0, 0)),
            ],
            out_specs=pl.BlockSpec((8, out_pad), lambda c, j: (c, 0)),
            scratch_shapes=[pltpu.VMEM((8, hidden_pad), jnp.float32)],
        ),
        compiler_params=pltpu.CompilerParams(
            dimension_semantics=("parallel", "arbitrary"),
            vmem_limit_bytes=_vmem_limit_bytes(),
        ),
    )(x, w1_p, b1_p, w2_p, b2_p)

    # Each shard writes 8 identical rows; take one per shard, sum shards, slice.
    partial = out.reshape(nc, 8, out_pad)[:, 0, :]
    return partial.sum(axis=0)[:num_outputs]


def init_params(key, num_inputs, num_outputs):
    """Deterministic init mimicking nn.Linear default (uniform +-1/sqrt(fan_in)).
    Weights stored pre-transposed relative to PyTorch's (out, in) layout."""
    k1, k2, k3, k4 = jax.random.split(key, 4)
    bound1 = 1.0 / np.sqrt(num_inputs)
    bound2 = 1.0 / np.sqrt(HIDDEN)
    w1 = jax.random.uniform(k1, (num_inputs, HIDDEN), jnp.float32, -bound1, bound1)
    b1 = jax.random.uniform(k2, (HIDDEN,), jnp.float32, -bound1, bound1)
    w2 = jax.random.uniform(k3, (HIDDEN, num_outputs), jnp.float32, -bound2, bound2)
    b2 = jax.random.uniform(k4, (num_outputs,), jnp.float32, -bound2, bound2)
    return w1, b1, w2, b2


if __name__ == "__main__":
    key = jax.random.PRNGKey(0)
    kx, kp = jax.random.split(key)

    B, num_inputs, num_outputs = 100, 32, 4
    x = jax.random.normal(kx, (B, num_inputs), jnp.float32)
    w1, b1, w2, b2 = init_params(kp, num_inputs, num_outputs)

    # Pure-JAX f32 reference with the module's exact semantics.
    h_ref = jnp.maximum(
        jnp.dot(x, w1, precision=jax.lax.Precision.HIGHEST) + b1, 0.0)
    y_ref = (jnp.dot(h_ref, w2, precision=jax.lax.Precision.HIGHEST) + b2).mean(axis=0)

    # Multi-tile config: exercises accumulation across tiles, the ragged last
    # tile's boundary mask, and the shard split on 2-TC chips.
    y_tiled = discriminator_forward(x, w1, b1, w2, b2, block_rows=32)
    jax.block_until_ready(y_tiled)
    np.testing.assert_allclose(np.asarray(y_tiled), np.asarray(y_ref),
                               rtol=5e-3, atol=5e-3)

    # Default config: single whole-batch tile at this small B.
    y_default = discriminator_forward(x, w1, b1, w2, b2)
    jax.block_until_ready(y_default)
    np.testing.assert_allclose(np.asarray(y_default), np.asarray(y_ref),
                               rtol=5e-3, atol=5e-3)

    # bf16-streamed x (producer supplies bf16 directly -> half the HBM bytes,
    # still no wrapper copy); compared against a bf16-adjusted reference.
    xb = x.astype(jnp.bfloat16)
    y_bf16 = discriminator_forward(xb, w1, b1, w2, b2, block_rows=32)
    jax.block_until_ready(y_bf16)
    xbf = xb.astype(jnp.float32)
    w1bf = w1.astype(jnp.bfloat16).astype(jnp.float32)
    h_bf = jnp.maximum(
        jnp.dot(xbf, w1bf, precision=jax.lax.Precision.HIGHEST) + b1, 0.0)
    y_bf_ref = (jnp.dot(h_bf, w2, precision=jax.lax.Precision.HIGHEST) + b2).mean(axis=0)
    np.testing.assert_allclose(np.asarray(y_bf16), np.asarray(y_bf_ref),
                               rtol=5e-3, atol=5e-3)

    print("KERNEL_OK")
</pallas_src>

<mosaic_0001>
module attributes {stable_mosaic.version = 11 : i64} {
  func.func @_discriminator_kernel(%arg0: i32, %arg1: i32, %arg2: memref<32x32xf32, #tpu.memory_space<vmem>>, %arg3: memref<32x128xf32, #tpu.memory_space<vmem>>, %arg4: memref<1x128xf32, #tpu.memory_space<vmem>>, %arg5: memref<128x128xf32, #tpu.memory_space<vmem>>, %arg6: memref<1x128xf32, #tpu.memory_space<vmem>>, %arg7: memref<8x128xf32, #tpu.memory_space<vmem>>, %arg8: memref<8x128xf32, #tpu.memory_space<vmem>>) attributes {dimension_semantics = [#tpu.dimension_semantics<parallel>, #tpu.dimension_semantics<arbitrary>], iteration_bounds = array<i64: 1, 4>, scalar_prefetch = 0 : i64, scratch_operands = 1 : i64, tpu.core_type = #tpu.core_type<tc>, window_params = [{transform_indices = @transform_0, window_bounds = array<i64: 32, 32>}, {pipeline_mode = #tpu.pipeline_mode<synchronous>, transform_indices = @transform_1, window_bounds = array<i64: 32, 128>}, {pipeline_mode = #tpu.pipeline_mode<synchronous>, transform_indices = @transform_2, window_bounds = array<i64: 1, 128>}, {pipeline_mode = #tpu.pipeline_mode<synchronous>, transform_indices = @transform_3, window_bounds = array<i64: 128, 128>}, {pipeline_mode = #tpu.pipeline_mode<synchronous>, transform_indices = @transform_4, window_bounds = array<i64: 1, 128>}, {transform_indices = @transform_5, window_bounds = array<i64: 8, 128>}]} {
    %c0_i32 = arith.constant 0 : i32
    %0 = arith.cmpi eq, %arg1, %c0_i32 : i32
    %1 = arith.extui %0 : i1 to i32
    %c0_i32_0 = arith.constant 0 : i32
    %2 = arith.cmpi ne, %1, %c0_i32_0 : i32
    scf.if %2 {
      %cst_13 = arith.constant 0.000000e+00 : f32
      %25 = vector.broadcast %cst_13 : f32 to vector<8x128xf32>
      %c0_14 = arith.constant 0 : index
      %c0_15 = arith.constant 0 : index
      %26 = vector.load %arg8[%c0_14, %c0_15] : memref<8x128xf32, #tpu.memory_space<vmem>>, vector<8x128xf32>
      tpu.vector_store %arg8[%c0_14, %c0_15], %25 {strides = array<i32>} : memref<8x128xf32, #tpu.memory_space<vmem>>, vector<8x128xf32>,
    } else {
    }
    %c0 = arith.constant 0 : index
    %c0_1 = arith.constant 0 : index
    %3 = vector.load %arg2[%c0, %c0_1] : memref<32x32xf32, #tpu.memory_space<vmem>>, vector<32x32xf32>
    %c0_2 = arith.constant 0 : index
    %c0_3 = arith.constant 0 : index
    %4 = vector.load %arg3[%c0_2, %c0_3] : memref<32x128xf32, #tpu.memory_space<vmem>>, vector<32x128xf32>
    %cst = arith.constant dense<0.000000e+00> : vector<32x128xf32>
    %5 = tpu.matmul %3, %4, %cst {dimension_numbers = #tpu.dot_dimension_numbers<[1], [0], [0], [1], [0, 0, 1, 1], [], []>} : vector<32x32xf32>, vector<32x128xf32>, vector<32x128xf32> -> vector<32x128xf32>
    %c0_4 = arith.constant 0 : index
    %c0_5 = arith.constant 0 : index
    %6 = vector.load %arg4[%c0_4, %c0_5] : memref<1x128xf32, #tpu.memory_space<vmem>>, vector<1x128xf32>
    %7 = vector.broadcast %6 : vector<1x128xf32> to vector<32x128xf32>
    %8 = arith.addf %5, %7 : vector<32x128xf32>
    %cst_6 = arith.constant 0.000000e+00 : f32
    %9 = vector.broadcast %cst_6 : f32 to vector<32x128xf32>
    %10 = arith.maximumf %8, %9 : vector<32x128xf32>
    %c4_i32 = arith.constant 4 : i32
    %11 = arith.muli %arg0, %c4_i32 : i32
    %12 = arith.addi %11, %arg1 : i32
    %c32_i32 = arith.constant 32 : i32
    %13 = arith.muli %12, %c32_i32 : i32
    %c32_i32_7 = arith.constant 32 : i32
    %14 = arith.addi %13, %c32_i32_7 : i32
    %c100_i32 = arith.constant 100 : i32
    %15 = arith.cmpi sle, %14, %c100_i32 : i32
    %16 = arith.extui %15 : i1 to i32
    %c0_i32_8 = arith.constant 0 : i32
    %17 = arith.cmpi ne, %16, %c0_i32_8 : i32
    scf.if %17 {
      %c0_13 = arith.constant 0 : index
      %c0_14 = arith.constant 0 : index
      %25 = vector.load %arg8[%c0_13, %c0_14] : memref<8x128xf32, #tpu.memory_space<vmem>>, vector<8x128xf32>
      %26 = vector.shape_cast %10 : vector<32x128xf32> to vector<4x8x128xf32>
      %cst_15 = arith.constant dense<0.000000e+00> : vector<8x128xf32>
      %27 = vector.multi_reduction <add>, %26, %cst_15 [0] : vector<4x8x128xf32> to vector<8x128xf32>
      %28 = arith.addf %25, %27 : vector<8x128xf32>
      %c0_16 = arith.constant 0 : index
      %c0_17 = arith.constant 0 : index
      %29 = vector.load %arg8[%c0_16, %c0_17] : memref<8x128xf32, #tpu.memory_space<vmem>>, vector<8x128xf32>
      tpu.vector_store %arg8[%c0_16, %c0_17], %28 {strides = array<i32>} : memref<8x128xf32, #tpu.memory_space<vmem>>, vector<8x128xf32>,
    } else {
    }
    %c32_i32_9 = arith.constant 32 : i32
    %18 = arith.addi %13, %c32_i32_9 : i32
    %c100_i32_10 = arith.constant 100 : i32
    %19 = arith.cmpi sgt, %18, %c100_i32_10 : i32
    %20 = arith.extui %19 : i1 to i32
    %c0_i32_11 = arith.constant 0 : i32
    %21 = arith.cmpi ne, %20, %c0_i32_11 : i32
    scf.if %21 {
      %25 = tpu.iota {dimensions = array<i32: 0>} : vector<32x1xi32>
      %26 = vector.broadcast %13 : i32 to vector<32x1xi32>
      %27 = arith.addi %26, %25 : vector<32x1xi32>
      %c100_i32_13 = arith.constant 100 : i32
      %28 = vector.broadcast %c100_i32_13 : i32 to vector<32x1xi32>
      %29 = arith.cmpi slt, %27, %28 : vector<32x1xi32>
      %cst_14 = arith.constant 0.000000e+00 : f32
      %30 = vector.shape_cast %29 : vector<32x1xi1> to vector<32x1xi1>
      %31 = vector.broadcast %30 : vector<32x1xi1> to vector<32x128xi1>
      %32 = vector.broadcast %cst_14 : f32 to vector<32x128xf32>
      %33 = arith.select %31, %10, %32 : vector<32x128xi1>, vector<32x128xf32>
      %c0_15 = arith.constant 0 : index
      %c0_16 = arith.constant 0 : index
      %34 = vector.load %arg8[%c0_15, %c0_16] : memref<8x128xf32, #tpu.memory_space<vmem>>, vector<8x128xf32>
      %35 = vector.shape_cast %33 : vector<32x128xf32> to vector<4x8x128xf32>
      %cst_17 = arith.constant dense<0.000000e+00> : vector<8x128xf32>
      %36 = vector.multi_reduction <add>, %35, %cst_17 [0] : vector<4x8x128xf32> to vector<8x128xf32>
      %37 = arith.addf %34, %36 : vector<8x128xf32>
      %c0_18 = arith.constant 0 : index
      %c0_19 = arith.constant 0 : index
      %38 = vector.load %arg8[%c0_18, %c0_19] : memref<8x128xf32, #tpu.memory_space<vmem>>, vector<8x128xf32>
      tpu.vector_store %arg8[%c0_18, %c0_19], %37 {strides = array<i32>} : memref<8x128xf32, #tpu.memory_space<vmem>>, vector<8x128xf32>,
    } else {
    }
    %c3_i32 = arith.constant 3 : i32
    %22 = arith.cmpi eq, %arg1, %c3_i32 : i32
    %23 = arith.extui %22 : i1 to i32
    %c0_i32_12 = arith.constant 0 : i32
    %24 = arith.cmpi ne, %23, %c0_i32_12 : i32
    scf.if %24 {
      %c0_13 = arith.constant 0 : index
      %c0_14 = arith.constant 0 : index
      %25 = vector.load %arg8[%c0_13, %c0_14] : memref<8x128xf32, #tpu.memory_space<vmem>>, vector<8x128xf32>
      %cst_15 = arith.constant dense<0.000000e+00> : vector<128xf32>
      %26 = vector.multi_reduction <add>, %25, %cst_15 [0] : vector<8x128xf32> to vector<128xf32>
      %27 = vector.shape_cast %26 : vector<128xf32> to vector<1x128xf32>
      %cst_16 = arith.constant 0.00999999977 : f32
      %28 = vector.broadcast %cst_16 : f32 to vector<1x128xf32>
      %29 = arith.mulf %27, %28 : vector<1x128xf32>
      %30 = vector.shape_cast %29 : vector<1x128xf32> to vector<1x128xf32>
      %31 = vector.broadcast %30 : vector<1x128xf32> to vector<8x128xf32>
      %c0_17 = arith.constant 0 : index
      %c0_18 = arith.constant 0 : index
      %32 = vector.load %arg5[%c0_17, %c0_18] : memref<128x128xf32, #tpu.memory_space<vmem>>, vector<128x128xf32>
      %cst_19 = arith.constant dense<0.000000e+00> : vector<8x128xf32>
      %33 = tpu.matmul %31, %32, %cst_19 {dimension_numbers = #tpu.dot_dimension_numbers<[1], [0], [0], [1], [0, 0, 1, 1], [], []>} : vector<8x128xf32>, vector<128x128xf32>, vector<8x128xf32> -> vector<8x128xf32>
      %c0_i32_20 = arith.constant 0 : i32
      %34 = arith.cmpi eq, %arg0, %c0_i32_20 : i32
      %35 = arith.extui %34 : i1 to i32
      %36 = arith.sitofp %35 : i32 to f32
      %c0_21 = arith.constant 0 : index
      %c0_22 = arith.constant 0 : index
      %37 = vector.load %arg6[%c0_21, %c0_22] : memref<1x128xf32, #tpu.memory_space<vmem>>, vector<1x128xf32>
      %38 = vector.broadcast %36 : f32 to vector<1x128xf32>
      %39 = arith.mulf %38, %37 : vector<1x128xf32>
      %40 = vector.broadcast %39 : vector<1x128xf32> to vector<8x128xf32>
      %41 = arith.addf %33, %40 : vector<8x128xf32>
      %c0_23 = arith.constant 0 : index
      %c0_24 = arith.constant 0 : index
      %42 = vector.load %arg7[%c0_23, %c0_24] : memref<8x128xf32, #tpu.memory_space<vmem>>, vector<8x128xf32>
      tpu.vector_store %arg7[%c0_23, %c0_24], %41 {strides = array<i32>} : memref<8x128xf32, #tpu.memory_space<vmem>>, vector<8x128xf32>,
    } else {
    }
    return
  }
  func.func @transform_0(%arg0: i32, %arg1: i32) -> (i32, i32) {
    %c4_i32 = arith.constant 4 : i32
    %0 = arith.muli %arg0, %c4_i32 : i32
    %1 = arith.addi %0, %arg1 : i32
    %c0_i32 = arith.constant 0 : i32
    %c0_i32_0 = arith.constant 0 : i32
    return %1, %c0_i32 : i32, i32
  }
  func.func @transform_1(%arg0: i32, %arg1: i32) -> (i32, i32) {
    %c0_i32 = arith.constant 0 : i32
    %c0_i32_0 = arith.constant 0 : i32
    %c0_i32_1 = arith.constant 0 : i32
    return %c0_i32, %c0_i32_0 : i32, i32
  }
  func.func @transform_2(%arg0: i32, %arg1: i32) -> (i32, i32) {
    %c0_i32 = arith.constant 0 : i32
    %c0_i32_0 = arith.constant 0 : i32
    %c0_i32_1 = arith.constant 0 : i32
    return %c0_i32, %c0_i32_0 : i32, i32
  }
  func.func @transform_3(%arg0: i32, %arg1: i32) -> (i32, i32) {
    %c0_i32 = arith.constant 0 : i32
    %c0_i32_0 = arith.constant 0 : i32
    %c0_i32_1 = arith.constant 0 : i32
    return %c0_i32, %c0_i32_0 : i32, i32
  }
  func.func @transform_4(%arg0: i32, %arg1: i32) -> (i32, i32) {
    %c0_i32 = arith.constant 0 : i32
    %c0_i32_0 = arith.constant 0 : i32
    %c0_i32_1 = arith.constant 0 : i32
    return %c0_i32, %c0_i32_0 : i32, i32
  }
  func.func @transform_5(%arg0: i32, %arg1: i32) -> (i32, i32) {
    %c0_i32 = arith.constant 0 : i32
    %c0_i32_0 = arith.constant 0 : i32
    return %arg0, %c0_i32 : i32, i32
  }
}

</mosaic_0001>

<bundles_post_ra>
// kernel: tpu_custom_call.1
= control target key start
LH: loop header
LB: loop body
LE: loop exit
PB: predicated region body
PF: predicated region fallthrough
CT: control target
= control target key end

     0   :  { %10 = vsyncpa [#allocation4], 0  ;;  %s831_s0 = inlined_call_operand.vmem [shape: f32[100,32], index: 0, kind: input, shape index: {}]   ;;  %s832_s1 = inlined_call_operand.hbm [shape: f32[32,128], index: 1, kind: input, shape index: {}]   ;;  %s833_s2 = inlined_call_operand.vmem [shape: f32[1,128], index: 2, kind: input, shape index: {}]   ;;  %s834_s3 = inlined_call_operand.vmem [shape: f32[128,128], index: 3, kind: input, shape index: {}]   ;;  %s835_s4 = inlined_call_operand.vmem [shape: f32[1,128], index: 4, kind: input, shape index: {}]   ;;  %s836_s5 = inlined_call_operand.hbm [shape: f32[8,128], index: 5, kind: output, shape index: {}]  }
   0x1   :  { %11 = vsyncpa [#allocation5], 0  ;;  %s730_s18 = smov 0   ;;  %s732_s19 = smov 0  }
   0x2   :  { %s734_s20 = smov 0  }
   0x3 LB: > { %s525_s21 = sadd.s32 4294967295, %s693_s20   ;;  %s26_s22 = sadd.s32 1, %s689_s19  ;;  %s693_s20 = sphi %s734_s20, %s17_s20   ;;  %s689_s19 = sphi %s732_s19, %s838_s19   ;;  %s685_s18 = sphi %s730_s18, %s837_s18  }
   0x4   : > { %p27_p0 = scmp.ge.s32.totalorder %s26_s22, 4  ;;  %p526_p1 = scmp.ge.s32.totalorder %s693_s20, 1 }
   0x5   : > { %p174_p2 = scmp.lt.s32.totalorder %s693_s20, 5  ;;  %p570_p4 = scmp.eq.s32.totalorder %s525_s21, 0 }
   0x6   : > { %s840_s22 = smov (%p27_p0, %s26_s22), 0  ;;  %s185_s25 = sshll.u32 %s832_s1, 4  ;;  %s186_s25 = int_to_ptr.hbm [resolvable:$true] %s185_s25 }
   0x7   : > { %p175_p3 = pnand %p526_p1, %p174_p2  ;;  %s695_s26 = smov [#allocation3]  }
   0x8   : > { %s187_s27 = sshll.u32 %s695_s26, 4  ;;  %s696_s28 = smov 128   ;;  %s188_s27 = int_to_ptr.vmem [resolvable:$true] %s187_s27 }
   0x9   : > { %p566_p5 = pneg %p175_p3  ;;  %s697_s29 = smov 8  }
   0xa   : > { %233 = sbr.rel (%p175_p3) target bundleno = 377 (0x179), region = 40 }
   0xb   : > { %p567_p6 = pnand %p570_p4, %p566_p5 }
   0xd   : > { %569 = dma.hbm_to_vmem [thread:$0]  (!%p567_p6), %s186_s25, 512, %s188_s27, [#allocation4], %s696_s28, %s696_s28, %s697_s29  }
   0xf   : > { %676 = dma.done.wait (%p570_p4), [#allocation4], 512  }
  0x10   : > { %678 = vsyncadd (%p570_p4), [#allocation4], 4294966784  ;;  %s531_s30 = sshll.u32 %s685_s18, 2  ;;  %p533_p8 = scmp.ne.s32.totalorder %s685_s18, 0 }
  0x11   : > { %p270_p7 = scmp.lt.s32.totalorder %s531_s30, 12 }
  0x12   : > { %284 = sbr.rel (%p533_p8) target bundleno = 25 (0x19), region = 48 }
  0x13   : > { %s842_s30 = smov (!%p270_p7, %s531_s30), 12 }
  0x14   : > { %s532_s6 = sshll.u32 %s842_s30, 3 }
  0x15   : > { %s273_s9 = scalar_lea.vmem %s831_s0, %s532_s6 }
  0x17   : > { %v698_v0 = vmov 0.0  }
  0x18   : > { %285 = vst [vmem:[#allocation2] sm:$0xff] %v698_v0 }
  0x19 PF: > { %v293_v1 = vld [vmem:[#allocation3 + $0x18] sm:$0xff]  ;;  %v292_v2 = vld [vmem:[#allocation3 + $0x10] sm:$0xff]  ;;  %v291_v3 = vld [vmem:[#allocation3 + $0x8] sm:$0xff]  ;;  %vm298_vm0 = vcmask 261120   ;;  %s538_s10 = sshll.u32 %s685_s18, 5 }
  0x1a   : > { %547 = vmatpush.msra.mxu2 %v293_v1  ;;  %548 = vmatpush.msra.mxu3 %v293_v1  ;;  %v290_v4 = vld [vmem:[#allocation3] sm:$0xff]  ;;  %v288_v5 = vld [vmem:[%s273_s9 + $0x10] sm:$0xff]  ;;  %v289_v6 = vld [vmem:[%s273_s9 + $0x18] sm:$0xff]  ;;  %s347_s11 = sadd.s32 32, %s538_s10 }
  0x1b   : > { %323 = vmatpush.msra.mxu0 %v293_v1  ;;  %546 = vmatpush.msra.mxu1 %v293_v1  ;;  %v286_v7 = vld [vmem:[%s273_s9] sm:$0xff]  ;;  %v287_v8 = vld [vmem:[%s273_s9 + $0x8] sm:$0xff]  ;;  %p539_p9 = scmp.gt.s32.totalorder %s347_s11, 100 }
  0x1c   : > { %550 = vmatpush.msra.mxu2 %v292_v2  ;;  %551 = vmatpush.msra.mxu3 %v292_v2  ;;  %v603_v9 = vld [vmem:[%s833_s2] ss:$0 sm:$0xff] }
  0x1d   : > { %324 = vmatpush.msra.mxu0 %v292_v2  ;;  %549 = vmatpush.msra.mxu1 %v292_v2 }
  0x1e   : > { %553 = vmatpush.msra.mxu2 %v291_v3  ;;  %554 = vmatpush.msra.mxu3 %v291_v3 }
  0x1f   : > { %325 = vmatpush.msra.mxu0 %v291_v3  ;;  %552 = vmatpush.msra.mxu1 %v291_v3 }
  0x20   : > { %556 = vmatpush.msra.mxu2 %v290_v4  ;;  %557 = vmatpush.msra.mxu3 %v290_v4 }
  0x21   : > { %536 = vmatmul.msk.f32.vlgmr.msra.gmra.mxu2 %vm298_vm0, %v288_v5  ;;  %537 = vmatmul.msk.f32.vlgmr.msra.gmra.mxu3 %vm298_vm0, %v289_v6 }
  0x22   : > { %326 = vmatpush.msra.mxu0 %v290_v4  ;;  %555 = vmatpush.msra.mxu1 %v290_v4 }
  0x23   : > { %534 = vmatmul.msk.f32.vlgmr.msra.gmra.mxu0 %vm298_vm0, %v286_v7  ;;  %535 = vmatmul.msk.f32.vlgmr.msra.gmra.mxu1 %vm298_vm0, %v287_v8 }
  0xa0   : > { %v328_v10 = vpop.f32.mrf.mxu0  ;;  %v331_v11 = vpop.f32.mrf.mxu1 }
  0xa1   : > { %v329_v12 = vadd.f32 %v603_v9, %v328_v10  ;;  %v332_v13 = vadd.f32 %v603_v9, %v331_v11 }
  0xa3   : > { %v340_v14 = vmax.f32 %v329_v12, 0.0  ;;  %v341_v15 = vmax.f32 %v332_v13, 0.0  ;;  %351 = sbr.rel (%p539_p9) target bundleno = 177 (0xb1), region = 52 }
  0xa4   : > { %v334_v16 = vpop.f32.mrf.mxu2  ;;  %v337_v17 = vpop.f32.mrf.mxu3 }
  0xa5   : > { %v335_v18 = vadd.f32 %v603_v9, %v334_v16  ;;  %v338_v19 = vadd.f32 %v603_v9, %v337_v17 }
  0xa7   : > { %v342_v20 = vmax.f32 %v335_v18, 0.0  ;;  %v343_v21 = vmax.f32 %v338_v19, 0.0 }
  0xa8   : > { %v353_v22 = vadd.f32 %v341_v15, %v340_v14  ;;  %v352_v24 = vld [vmem:[#allocation2] sm:$0xff] }
  0xaa   : > { %v354_v23 = vadd.f32 %v353_v22, %v342_v20 }
  0xac   : > { %v355_v25 = vadd.f32 %v354_v23, %v343_v21 }
  0xae   : > { %v356_v26 = vadd.f32 %v355_v25, %v352_v24 }
  0xb0   : > { %357 = vst [vmem:[#allocation2] sm:$0xff] %v356_v26 }
  0xb1 PF: > { %p540_p10 = scmp.le.s32.totalorder %s347_s11, 100 }
  0xb3   : > { %361 = sbr.rel (%p540_p10) target bundleno = 203 (0xcb), region = 56 }
  0xb8   : > { %v362_v27 = vlaneseq  ;;  %v367_v28 = vstv %s538_s10  ;;  %v388_v43 = vld [vmem:[#allocation2] sm:$0xff] }
  0xba   : > { %v363_v29 = vshrl.u32 %v362_v27, 7 }
  0xbc   : > { %v364_v30 = vadd.s32 8, %v363_v29  ;;  %v365_v31 = vadd.s32 16, %v363_v29  ;;  %v366_v32 = vadd.s32 24, %v363_v29  ;;  %v368_v33 = vadd.s32 %v367_v28, %v363_v29 }
  0xbe   : > { %v369_v34 = vadd.s32 %v367_v28, %v364_v30  ;;  %v370_v35 = vadd.s32 %v367_v28, %v365_v31  ;;  %v371_v36 = vadd.s32 %v367_v28, %v366_v32  ;;  %vm372_vm1 = vcmp.lt.s32.totalorder %v368_v33, 100 }
  0xbf   : > { %v384_v37 = vsel %vm372_vm1, %v340_v14, 0.0 }
  0xc0   : > { %vm373_vm2 = vcmp.lt.s32.totalorder %v369_v34, 100  ;;  %vm374_vm3 = vcmp.lt.s32.totalorder %v370_v35, 100  ;;  %vm375_vm4 = vcmp.lt.s32.totalorder %v371_v36, 100 }
  0xc1   : > { %v385_v38 = vsel %vm373_vm2, %v341_v15, 0.0  ;;  %v386_v39 = vsel %vm374_vm3, %v342_v20, 0.0  ;;  %v387_v41 = vsel %vm375_vm4, %v343_v21, 0.0 }
  0xc2   : > { %v389_v40 = vadd.f32 %v385_v38, %v384_v37 }
  0xc4   : > { %v390_v42 = vadd.f32 %v389_v40, %v386_v39 }
  0xc6   : > { %v391_v44 = vadd.f32 %v390_v42, %v387_v41 }
  0xc8   : > { %v392_v45 = vadd.f32 %v391_v44, %v388_v43 }
  0xca   : > { %393 = vst [vmem:[#allocation2] sm:$0xff] %v392_v45 }
  0xcb PF: > { %p541_p11 = scmp.ne.s32.totalorder %s685_s18, 3 }
  0xcd   : > { %397 = sbr.rel (%p541_p11) target bundleno = 371 (0x173), region = 60 }
  0xd2   : > { %v421_v46 = vld [vmem:[%s834_s3 + $0x78] sm:$0xff]  ;;  %v420_v47 = vld [vmem:[%s834_s3 + $0x70] sm:$0xff]  ;;  %v419_v48 = vld [vmem:[%s834_s3 + $0x68] sm:$0xff] }
  0xd3   : > { %431 = vmatpush.msra.mxu0 %v421_v46  ;;  %v418_v49 = vld [vmem:[%s834_s3 + $0x60] sm:$0xff]  ;;  %v417_v51 = vld [vmem:[%s834_s3 + $0x58] sm:$0xff]  ;;  %v416_v53 = vld [vmem:[%s834_s3 + $0x50] sm:$0xff] }
  0xd4   : > { %v398_v50 = vld [vmem:[#allocation2] sm:$0xff]  ;;  %v415_v55 = vld [vmem:[%s834_s3 + $0x48] sm:$0xff]  ;;  %v413_v58 = vld [vmem:[%s834_s3 + $0x38] sm:$0xff] }
  0xd5   : > { %432 = vmatpush.msra.mxu0 %v420_v47  ;;  %v399_v52 = vrot.slane %v398_v50, 4  ;;  %v414_v56 = vld [vmem:[%s834_s3 + $0x40] sm:$0xff]  ;;  %v412_v59 = vld [vmem:[%s834_s3 + $0x30] sm:$0xff]  ;;  %v411_v61 = vld [vmem:[%s834_s3 + $0x28] sm:$0xff] }
  0xd6   : > { %v410_v62 = vld [vmem:[%s834_s3 + $0x20] sm:$0xff]  ;;  %v409_v0 = vld [vmem:[%s834_s3 + $0x18] sm:$0xff]  ;;  %v408_v1 = vld [vmem:[%s834_s3 + $0x10] sm:$0xff] }
  0xd7   : > { %433 = vmatpush.msra.mxu0 %v419_v48  ;;  %v400_v54 = vadd.f32 %v399_v52, %v398_v50  ;;  %v407_v3 = vld [vmem:[%s834_s3 + $0x8] sm:$0xff]  ;;  %v406_v4 = vld [vmem:[%s834_s3] sm:$0xff] }
  0xd8   : > { %v604_v6 = vld [vmem:[%s835_s4] ss:$0 sm:$0xff] }
  0xd9   : > { %434 = vmatpush.msra.mxu0 %v418_v49  ;;  %v401_v57 = vrot.slane %v400_v54, 2 }
  0xdb   : > { %435 = vmatpush.msra.mxu0 %v417_v51  ;;  %v402_v60 = vadd.f32 %v401_v57, %v400_v54 }
  0xdd   : > { %436 = vmatpush.msra.mxu0 %v416_v53  ;;  %v403_v63 = vrot.slane %v402_v60, 1 }
  0xdf   : > { %437 = vmatpush.msra.mxu0 %v415_v55  ;;  %v404_v2 = vadd.f32 %v403_v63, %v402_v60 }
  0xe1   : > { %438 = vmatpush.msra.mxu0 %v414_v56  ;;  %v405_v5 = vmul.f32 0.01, %v404_v2 }
  0xe3   : > { %439 = vmatpush.msra.mxu0 %v413_v58 }
  0xe5   : > { %440 = vmatpush.msra.mxu0 %v412_v59 }
  0xe7   : > { %441 = vmatpush.msra.mxu0 %v411_v61 }
  0xe9   : > { %442 = vmatpush.msra.mxu0 %v410_v62 }
  0xeb   : > { %443 = vmatpush.msra.mxu0 %v409_v0 }
  0xed   : > { %444 = vmatpush.msra.mxu0 %v408_v1 }
  0xef   : > { %445 = vmatpush.msra.mxu0 %v407_v3 }
  0xf1   : > { %446 = vmatpush.msra.mxu0 %v406_v4 }
  0xf2   : > { %447 = vmatmul.f32.vlgmr.msra.gmra.mxu0 %v405_v5 }
 0x16f   : > { %v448_v7 = vpop.f32.mrf.mxu0 }
 0x170   : > { %v449_v8 = vadd.f32 %v604_v6, %v448_v7 }
 0x172   : > { %451 = vst [vmem:[#allocation6] sm:$0xff] %v449_v8 }
 0x173 PF: > { %p572_p12 = scmp.eq.s32.totalorder %s525_s21, 3  ;;  %s462_s8 = sshll.u32 %s836_s5, 4  ;;  %s463_s8 = int_to_ptr.hbm [resolvable:$true] %s462_s8 }
 0x174   : > { %s699_s9 = smov [#allocation6]  }
 0x175   : > { %s460_s10 = sshll.u32 %s699_s9, 4  ;;  %s461_s10 = int_to_ptr.vmem [resolvable:$true] %s460_s10 }
 0x176   : > { %563 = dma.vmem_to_hbm [thread:$0]  (%p572_p12), %s461_s10, 128, %s463_s8, [#allocation5]  }
 0x177   : > { %680 = dma.done.wait (%p572_p12), [#allocation5], 128  }
 0x178   : > { %682 = vsyncadd (%p572_p12), [#allocation5], 4294967168 }
 0x179 PF: > { %s17_s20 = sadd.s32 1, %s693_s20   ;;  %s837_s18 = smov %s689_s19 }
 0x17a   : > { %p14_p13 = scmp.ge.s32.totalorder %s17_s20, 6   ;;  %s838_s19 = smov %s840_s22 }
 0x17c   :  { %16 = sbr.rel (!%p14_p13) target bundleno = 3 (0x3), region = 89 }
 0x181   :  { %476 = vsyncpa [#allocation4], 1 }
 0x182   :  { %478 = vsyncpa [#allocation4 + $0x1], 1 }
 0x183   :  { %479 = vsyncpa [#allocation5], 1 }
 0x184   :  { %481 = vsyncpa [#allocation5 + $0x1], 1 }

</bundles_post_ra>
